<compile_context>
chip_gen: v5e
topology: v5e:2x2
jax: 0.10.0
libtpu: 0.0.40
codegen_flags: <defaults>
</compile_context>

<pallas_src>
import functools
import math

import jax
import jax.numpy as jnp
from jax import lax
from jax.experimental import pallas as pl
from jax.experimental.pallas import tpu as pltpu

_EPS = 1e-6  # F.pairwise_distance default eps (added to the difference)


def _round_up(x, m):
    return ((x + m - 1) // m) * m


def cris_kernel(user_ref, item_ref, w_cross_ref, w_sum_ref, pnorm_ref, out_ref):
    # user_ref/item_ref: [TBp, Kp] f32 — lane-dense packed batch tile
    #                    (each packed row holds P original batch rows of K feats)
    # w_cross_ref:       [Kp, 2P] f32 — block-diag replication of (proto+eps).T
    # w_sum_ref:         [Kp, 2P] f32 — block-diag ones (segmented row-sum on MXU)
    # pnorm_ref:         [1, 2P]  f32 — ||proto_c + eps||^2 per output column
    # out_ref:           [TBp, 2P] f32 — col 2j+c = dist(batch row r*P+j, proto c)
    ui = user_ref[...] + item_ref[...]                       # [TBp, Kp]

    # Cross term and segmented squared-norms via the (otherwise idle) MXU.
    cross = jnp.dot(ui, w_cross_ref[...],
                    preferred_element_type=jnp.float32,
                    precision=lax.Precision.HIGHEST)         # [TBp, 2P]
    sq = jnp.dot(ui * ui, w_sum_ref[...],
                 preferred_element_type=jnp.float32,
                 precision=lax.Precision.HIGHEST)            # [TBp, 2P]

    # dist^2 = ||ui||^2 - 2*ui.(p+eps) + ||p+eps||^2 ; clamp for FP cancellation.
    d2 = sq - 2.0 * cross + pnorm_ref[...]
    out_ref[...] = jnp.sqrt(jnp.maximum(d2, 0.0))


@functools.partial(jax.jit, static_argnames=("tb",))
def cris_forward(ebd_user, ebd_item, ebd_prototype, user_idx, item_idx, *, tb=4096):
    """Forward pass of CRIS. Returns (c_dist, i_dist), each shape [B]."""
    # Embedding gathers = pure indexing glue, kept in plain JAX (co-jitted).
    emb_u = jnp.take(ebd_user, user_idx, axis=0).astype(jnp.float32)   # [B, K]
    emb_i = jnp.take(ebd_item, item_idx, axis=0).astype(jnp.float32)   # [B, K]
    B, K = emb_u.shape
    n_proto = ebd_prototype.shape[0]                                   # = 2

    # Pack P batch rows per 128-lane row when K divides 128 (K=32 -> P=4).
    P = 128 // K if (K <= 128 and 128 % K == 0) else 1
    Kp = P * K
    Cp = P * n_proto

    # Batch tile (in original rows): multiple of 8*P sublane groups, capped at
    # tb (default 4096 -> ~1 MiB of input per grid step), collapsed for small B.
    row_align = 8 * P
    TB = _round_up(max(1, min(tb, B)), row_align)
    Bp = _round_up(B, TB)
    if Bp != B:
        pad = ((0, Bp - B), (0, 0))
        emb_u = jnp.pad(emb_u, pad)
        emb_i = jnp.pad(emb_i, pad)

    user_p = emb_u.reshape(Bp // P, Kp)     # free contiguous view, lane-dense
    item_p = emb_i.reshape(Bp // P, Kp)
    TBp = TB // P

    # Small constant operands built once (resident in VMEM across grid steps).
    proto = ebd_prototype.astype(jnp.float32) + _EPS                   # [2, K]
    eye_p = jnp.eye(P, dtype=jnp.float32)
    w_cross = jnp.kron(eye_p, proto.T)                                 # [Kp, Cp]
    w_sum = jnp.kron(eye_p, jnp.ones((K, n_proto), jnp.float32))       # [Kp, Cp]
    pnorm = jnp.tile(jnp.sum(proto * proto, axis=1), P)[None, :]       # [1, Cp]

    out_p = pl.pallas_call(
        cris_kernel,
        out_shape=jax.ShapeDtypeStruct((Bp // P, Cp), jnp.float32),
        grid=(Bp // TB,),
        in_specs=[
            pl.BlockSpec((TBp, Kp), lambda b: (b, 0)),   # packed user tile
            pl.BlockSpec((TBp, Kp), lambda b: (b, 0)),   # packed item tile
            pl.BlockSpec((Kp, Cp), lambda b: (0, 0)),    # cross weights (const)
            pl.BlockSpec((Kp, Cp), lambda b: (0, 0)),    # segment-sum weights
            pl.BlockSpec((1, Cp), lambda b: (0, 0)),     # prototype norms
        ],
        out_specs=pl.BlockSpec((TBp, Cp), lambda b: (b, 0)),
        compiler_params=pltpu.CompilerParams(
            dimension_semantics=("parallel",),           # megacore sharding (v7x)
            vmem_limit_bytes=32 * 1024 * 1024,           # few-MiB footprint: safe
        ),
    )(user_p, item_p, w_cross, w_sum, pnorm)

    dist = out_p.reshape(Bp, n_proto)[:B]                # unpack, drop pad rows
    return dist[:, 0], dist[:, 1]


def _xavier_normal(key, fan_out, fan_in):
    # nn.init.xavier_normal_ for an Embedding weight of shape [fan_out, fan_in]
    std = math.sqrt(2.0 / (fan_in + fan_out))
    return std * jax.random.normal(key, (fan_out, fan_in), dtype=jnp.float32)


if __name__ == "__main__":
    # Small synthetic config: opt.K=32, opt.numuser=10, opt.numitem=20.
    # B=100 with tb=64 exercises a multi-step grid (2 batch tiles of 64 rows)
    # plus the batch-padding path (100 -> 128 rows).
    K = 32
    NUMUSER = 10
    NUMITEM = 20
    NUM_PROTOTYPE = 2
    B = 100

    key = jax.random.PRNGKey(0)
    k_user, k_item, k_proto, k_uidx, k_iidx = jax.random.split(key, 5)

    ebd_user = _xavier_normal(k_user, NUMUSER + 1, K)          # [numuser+1, K]
    ebd_item = _xavier_normal(k_item, NUMITEM + 1, K)          # [numitem+1, K]
    ebd_prototype = _xavier_normal(k_proto, NUM_PROTOTYPE, K)  # [2, K]

    user_idx = jax.random.randint(k_uidx, (B,), 0, NUMUSER + 1, dtype=jnp.int32)
    item_idx = jax.random.randint(k_iidx, (B,), 0, NUMITEM + 1, dtype=jnp.int32)

    c_dist, i_dist = cris_forward(ebd_user, ebd_item, ebd_prototype,
                                  user_idx, item_idx, tb=64)
    jax.block_until_ready((c_dist, i_dist))

    # Pure-JAX reference (mirrors the PyTorch forward exactly, elementwise form).
    ui = jnp.take(ebd_user, user_idx, axis=0) + jnp.take(ebd_item, item_idx, axis=0)
    c_ref = jnp.sqrt(jnp.sum((ebd_prototype[0][None, :] - ui + _EPS) ** 2, axis=-1))
    i_ref = jnp.sqrt(jnp.sum((ebd_prototype[1][None, :] - ui + _EPS) ** 2, axis=-1))
    assert c_dist.shape == (B,) and i_dist.shape == (B,)
    assert jnp.allclose(c_dist, c_ref, atol=1e-4, rtol=1e-4)
    assert jnp.allclose(i_dist, i_ref, atol=1e-4, rtol=1e-4)

    print("KERNEL_OK")
</pallas_src>

<mosaic_0001>
module attributes {stable_mosaic.version = 11 : i64} {
  func.func @cris_kernel(%arg0: i32, %arg1: memref<16x128xf32, #tpu.memory_space<vmem>>, %arg2: memref<16x128xf32, #tpu.memory_space<vmem>>, %arg3: memref<128x8xf32, #tpu.memory_space<vmem>>, %arg4: memref<128x8xf32, #tpu.memory_space<vmem>>, %arg5: memref<1x8xf32, #tpu.memory_space<vmem>>, %arg6: memref<16x8xf32, #tpu.memory_space<vmem>>) attributes {dimension_semantics = [#tpu.dimension_semantics<parallel>], iteration_bounds = array<i64: 2>, scalar_prefetch = 0 : i64, scratch_operands = 0 : i64, tpu.core_type = #tpu.core_type<tc>, window_params = [{transform_indices = @transform_0, window_bounds = array<i64: 16, 128>}, {transform_indices = @transform_1, window_bounds = array<i64: 16, 128>}, {pipeline_mode = #tpu.pipeline_mode<synchronous>, transform_indices = @transform_2, window_bounds = array<i64: 128, 8>}, {pipeline_mode = #tpu.pipeline_mode<synchronous>, transform_indices = @transform_3, window_bounds = array<i64: 128, 8>}, {pipeline_mode = #tpu.pipeline_mode<synchronous>, transform_indices = @transform_4, window_bounds = array<i64: 1, 8>}, {transform_indices = @transform_5, window_bounds = array<i64: 16, 8>}]} {
    %c0 = arith.constant 0 : index
    %c0_0 = arith.constant 0 : index
    %0 = vector.load %arg1[%c0, %c0_0] : memref<16x128xf32, #tpu.memory_space<vmem>>, vector<16x128xf32>
    %c0_1 = arith.constant 0 : index
    %c0_2 = arith.constant 0 : index
    %1 = vector.load %arg2[%c0_1, %c0_2] : memref<16x128xf32, #tpu.memory_space<vmem>>, vector<16x128xf32>
    %2 = arith.addf %0, %1 : vector<16x128xf32>
    %c0_3 = arith.constant 0 : index
    %c0_4 = arith.constant 0 : index
    %3 = vector.load %arg3[%c0_3, %c0_4] : memref<128x8xf32, #tpu.memory_space<vmem>>, vector<128x8xf32>
    %cst = arith.constant dense<0.000000e+00> : vector<16x8xf32>
    %4 = tpu.matmul %2, %3, %cst {dimension_numbers = #tpu.dot_dimension_numbers<[1], [0], [0], [1], [0, 0, 1, 1], [], []>, precision = #tpu.contract_precision<fp32>} : vector<16x128xf32>, vector<128x8xf32>, vector<16x8xf32> -> vector<16x8xf32>
    %5 = arith.mulf %2, %2 : vector<16x128xf32>
    %c0_5 = arith.constant 0 : index
    %c0_6 = arith.constant 0 : index
    %6 = vector.load %arg4[%c0_5, %c0_6] : memref<128x8xf32, #tpu.memory_space<vmem>>, vector<128x8xf32>
    %cst_7 = arith.constant dense<0.000000e+00> : vector<16x8xf32>
    %7 = tpu.matmul %5, %6, %cst_7 {dimension_numbers = #tpu.dot_dimension_numbers<[1], [0], [0], [1], [0, 0, 1, 1], [], []>, precision = #tpu.contract_precision<fp32>} : vector<16x128xf32>, vector<128x8xf32>, vector<16x8xf32> -> vector<16x8xf32>
    %cst_8 = arith.constant 2.000000e+00 : f32
    %8 = vector.broadcast %cst_8 : f32 to vector<16x8xf32>
    %9 = arith.mulf %8, %4 : vector<16x8xf32>
    %10 = arith.subf %7, %9 : vector<16x8xf32>
    %c0_9 = arith.constant 0 : index
    %c0_10 = arith.constant 0 : index
    %11 = vector.load %arg5[%c0_9, %c0_10] : memref<1x8xf32, #tpu.memory_space<vmem>>, vector<1x8xf32>
    %12 = vector.broadcast %11 : vector<1x8xf32> to vector<16x8xf32>
    %13 = arith.addf %10, %12 : vector<16x8xf32>
    %cst_11 = arith.constant 0.000000e+00 : f32
    %14 = vector.broadcast %cst_11 : f32 to vector<16x8xf32>
    %15 = arith.maximumf %13, %14 : vector<16x8xf32>
    %16 = math.sqrt %15 : vector<16x8xf32>
    %c0_12 = arith.constant 0 : index
    %c0_13 = arith.constant 0 : index
    %17 = vector.load %arg6[%c0_12, %c0_13] : memref<16x8xf32, #tpu.memory_space<vmem>>, vector<16x8xf32>
    tpu.vector_store %arg6[%c0_12, %c0_13], %16 {strides = array<i32>} : memref<16x8xf32, #tpu.memory_space<vmem>>, vector<16x8xf32>,
    return
  }
  func.func @transform_0(%arg0: i32) -> (i32, i32) {
    %c0_i32 = arith.constant 0 : i32
    %c0_i32_0 = arith.constant 0 : i32
    return %arg0, %c0_i32 : i32, i32
  }
  func.func @transform_1(%arg0: i32) -> (i32, i32) {
    %c0_i32 = arith.constant 0 : i32
    %c0_i32_0 = arith.constant 0 : i32
    return %arg0, %c0_i32 : i32, i32
  }
  func.func @transform_2(%arg0: i32) -> (i32, i32) {
    %c0_i32 = arith.constant 0 : i32
    %c0_i32_0 = arith.constant 0 : i32
    %c0_i32_1 = arith.constant 0 : i32
    return %c0_i32, %c0_i32_0 : i32, i32
  }
  func.func @transform_3(%arg0: i32) -> (i32, i32) {
    %c0_i32 = arith.constant 0 : i32
    %c0_i32_0 = arith.constant 0 : i32
    %c0_i32_1 = arith.constant 0 : i32
    return %c0_i32, %c0_i32_0 : i32, i32
  }
  func.func @transform_4(%arg0: i32) -> (i32, i32) {
    %c0_i32 = arith.constant 0 : i32
    %c0_i32_0 = arith.constant 0 : i32
    %c0_i32_1 = arith.constant 0 : i32
    return %c0_i32, %c0_i32_0 : i32, i32
  }
  func.func @transform_5(%arg0: i32) -> (i32, i32) {
    %c0_i32 = arith.constant 0 : i32
    %c0_i32_0 = arith.constant 0 : i32
    return %arg0, %c0_i32 : i32, i32
  }
}

</mosaic_0001>

<bundles_post_ra>
// kernel: tile.8
= control target key start
LH: loop header
LB: loop body
LE: loop exit
PB: predicated region body
PF: predicated region fallthrough
CT: control target
= control target key end

     0   :  { %s22_s0 = inlined_call_operand.vmem [shape: f32[2], index: 0, kind: input, shape index: {}]   ;;  %s23_s1 = inlined_call_operand.vmem [shape: f32[4,2], index: 1, kind: output, shape index: {}]  }
   0x1   :  { %v4_v0 = vld [vmem:[%s22_s0] ss:$0 sm:$0xff] }
   0x2   :  { %5 = vst [vmem:[%s23_s1] sm:$0xf] %v4_v0 }

// kernel: tile.9
= control target key start
LH: loop header
LB: loop body
LE: loop exit
PB: predicated region body
PF: predicated region fallthrough
CT: control target
= control target key end

     0   :  { %s37_s8 = smov 2   ;;  %s38_s9 = smov 4   ;;  %vm7_vm0 = vcmask 15360   ;;  %vm13_vm1 = vcmask 64560   ;;  %vm19_vm2 = vcmask 48160   ;;  %vm25_vm3 = vcmask 31760   ;;  %s55_s0 = inlined_call_operand.vmem [shape: f32[4,2], index: 0, kind: input, shape index: {}]   ;;  %s56_s1 = inlined_call_operand.vmem [shape: f32[1,8], index: 1, kind: output, shape index: {}]  }
   0x1   :  { %v4_v0 = vld [vmem:[%s55_s0] sm:$0xf]  ;;  %s36_s0 = smov 6  }
   0x2   :  { %5 = vst [vmem:[#allocation1] sm:$0xf] %v4_v0 }
   0x9   :  { %v10_v1 = vld [vmem:[#allocation1 + $0x3] sm:$0x1]   ;;  %v22_v2 = vld [vmem:[#allocation1 + $0x1] sm:$0x1]   ;;  %v16_v3 = vld [vmem:[#allocation1 + $0x2] sm:$0x1]  }
   0xa   :  { %11 = vrot.lane.b32.xlu0 %v10_v1, %s36_s0  ;;  %23 = vrot.lane.b32.xlu1 %v22_v2, %s37_s8  ;;  %v6_v4 = vld [vmem:[#allocation1] sm:$0x1]  }
   0xb   :  { %8 = vst.msk [vmem:[#allocation0] sm:$0x1] %vm7_vm0, %v6_v4  }
  0x12   :  { %17 = vrot.lane.b32.xlu0 %v16_v3, %s38_s9 }
  0x7c   :  { %v12_v5 = vpop.permute.xlu0 %11   ;;  %v24_v6 = vpop.permute.xlu1 %23  }
  0x7d   :  { %14 = vst.msk [vmem:[#allocation0] sm:$0x1] %vm13_vm1, %v12_v5  }
  0x84   :  { %v18_v7 = vpop.permute.xlu0 %17  }
  0x85   :  { %20 = vst.msk [vmem:[#allocation0] sm:$0x1] %vm19_vm2, %v18_v7  }
  0x86   :  { %26 = vst.msk [vmem:[#allocation0] sm:$0x1] %vm25_vm3, %v24_v6  }
  0x8d   :  { %v29_v8 = vld [vmem:[#allocation0] sm:$0x1] }
  0x8e   :  { %32 = vst [vmem:[%s56_s1] sm:$0x1] %v29_v8 }

// kernel: mul.22
= control target key start
LH: loop header
LB: loop body
LE: loop exit
PB: predicated region body
PF: predicated region fallthrough
CT: control target
= control target key end

     0   :  { %s34_s0 = inlined_call_operand.vmem [shape: f32[128,8], index: 0, kind: input, shape index: {}]   ;;  %s35_s1 = inlined_call_operand.vmem [shape: f32[128,8], index: 1, kind: input, shape index: {}]   ;;  %s36_s2 = inlined_call_operand.vmem [shape: f32[128,8], index: 2, kind: output, shape index: {}]  }
   0x1   :  { %v3_v0 = vld [vmem:[%s34_s0] sm:$0xff] }
   0x2   :  { %v4_v1 = vld [vmem:[%s35_s1] sm:$0xff] }
   0x3   :  { %v7_v2 = vmul.f32 %v4_v1, %v3_v0 }
   0x5   :  { %9 = vst [vmem:[%s36_s2] sm:$0xff] %v7_v2 }

// kernel: cris_forward.1
= control target key start
LH: loop header
LB: loop body
LE: loop exit
PB: predicated region body
PF: predicated region fallthrough
CT: control target
= control target key end

     0   :  { %s1205_s18 = smov 0   ;;  %s1888_s0 = inlined_call_operand.vmem [shape: f32[32,128], index: 0, kind: input, shape index: {}]   ;;  %s1889_s1 = inlined_call_operand.vmem [shape: f32[32,128], index: 1, kind: input, shape index: {}]   ;;  %s1890_s2 = inlined_call_operand.vmem [shape: f32[128,8], index: 2, kind: input, shape index: {}]   ;;  %s1891_s3 = inlined_call_operand.vmem [shape: f32[128,8], index: 3, kind: input, shape index: {}]   ;;  %s1892_s4 = inlined_call_operand.vmem [shape: f32[1,8], index: 4, kind: input, shape index: {}]   ;;  %s1893_s5 = inlined_call_operand.vmem [shape: f32[32,8], index: 5, kind: output, shape index: {}]  }
   0x1 LB: > { %s1141_s19 = sadd.s32 4294967295, %s1173_s18   ;;  %p1145_p0 = scmp.ge.s32.totalorder %s1173_s18, 1  ;;  %s1173_s18 = sphi %s1205_s18, %s15_s18  }
   0x2   : > { %p199_p1 = scmp.lt.s32.totalorder %s1173_s18, 3 }
   0x4   : > { %p200_p2 = pnand %p1145_p0, %p199_p1 }
   0x6   : > { %203 = sbr.rel (%p200_p2) target bundleno = 292 (0x124), region = 40 }
   0xb   : > { %v271_v0 = vld [vmem:[%s1890_s2 + $0x78] sm:$0xff]  ;;  %v270_v1 = vld [vmem:[%s1890_s2 + $0x70] sm:$0xff]  ;;  %v269_v2 = vld [vmem:[%s1890_s2 + $0x68] sm:$0xff]  ;;  %s1370_s29 = sshll.u32 %s1141_s19, 1  ;;  %vm1070_vm1 = vcmask 64512  }
   0xc   : > { %v1222_v3 = vand.u32 4294901760, %v271_v0  ;;  %v1224_v4 = vand.u32 4294901760, %v270_v1  ;;  %v1226_v5 = vand.u32 4294901760, %v269_v2  ;;  %v268_v6 = vld [vmem:[%s1890_s2 + $0x60] sm:$0xff]  ;;  %v267_v7 = vld [vmem:[%s1890_s2 + $0x58] sm:$0xff]  ;;  %v266_v8 = vld [vmem:[%s1890_s2 + $0x50] sm:$0xff] }
   0xd   : > { %v1237_v9 = vand.u32 4294901760, %v268_v6  ;;  %v1239_v10 = vand.u32 4294901760, %v267_v7  ;;  %v1241_v11 = vand.u32 4294901760, %v266_v8  ;;  %v265_v12 = vld [vmem:[%s1890_s2 + $0x48] sm:$0xff]  ;;  %v264_v13 = vld [vmem:[%s1890_s2 + $0x40] sm:$0xff]  ;;  %v263_v21 = vld [vmem:[%s1890_s2 + $0x38] sm:$0xff] }
   0xe   : > { %273 = vmatpush.msra.mxu0 %v1222_v3  ;;  %v1251_v14 = vsub.f32 %v271_v0, %v1222_v3  ;;  %v1254_v15 = vsub.f32 %v270_v1, %v1224_v4  ;;  %486 = vmatpush.msra.mxu3 %v1222_v3  ;;  %v1258_v16 = vsub.f32 %v269_v2, %v1226_v5  ;;  %v1260_v17 = vand.u32 4294901760, %v265_v12  ;;  %v262_v26 = vld [vmem:[%s1890_s2 + $0x30] sm:$0xff]  ;;  %v261_v36 = vld [vmem:[%s1890_s2 + $0x28] sm:$0xff]  ;;  %v260_v42 = vld [vmem:[%s1890_s2 + $0x20] sm:$0xff]  ;;  %p233_p3 = scmp.lt.s32.totalorder %s1370_s29, 3 }
   0xf   : > { %v1263_v18 = vsub.f32 %v268_v6, %v1237_v9  ;;  %v1266_v19 = vsub.f32 %v267_v7, %v1239_v10  ;;  %v1269_v20 = vsub.f32 %v266_v8, %v1241_v11  ;;  %v1279_v25 = vand.u32 4294901760, %v264_v13  ;;  %v259_v48 = vld [vmem:[%s1890_s2 + $0x18] sm:$0xff]  ;;  %v258_v54 = vld [vmem:[%s1890_s2 + $0x10] sm:$0xff]  ;;  %v257_v59 = vld [vmem:[%s1890_s2 + $0x8] sm:$0xff] }
  0x10   : > { %275 = vmatpush.msra.mxu0 %v1224_v4  ;;  %428 = vmatpush.msra.mxu2 %v1251_v14  ;;  %v323_v22 = vand.u32 4294901760, %v1251_v14  ;;  %v1908_v23 = vand.u32 4294901760, %v1254_v15  ;;  %v1907_v24 = vand.u32 4294901760, %v1258_v16  ;;  %v1288_v29 = vsub.f32 %v265_v12, %v1260_v17  ;;  %v661_v60 = vld [vmem:[%s1891_s3 + $0x78] sm:$0xff]  ;;  %v660_v2 = vld [vmem:[%s1891_s3 + $0x70] sm:$0xff]  ;;  %v256_v7 = vld [vmem:[%s1890_s2] sm:$0xff] }
  0x11   : > { %488 = vmatpush.msra.mxu3 %v1224_v4  ;;  %v1906_v27 = vand.u32 4294901760, %v1263_v18  ;;  %v1903_v28 = vand.u32 4294901760, %v1266_v19  ;;  %v1301_v33 = vand.u32 4294901760, %v263_v21  ;;  %v1304_v34 = vand.u32 4294901760, %v262_v26  ;;  %s1955_s29 = smov (!%p233_p3, %s1370_s29), 3 }
  0x12   : > { %277 = vmatpush.msra.mxu0 %v1226_v5  ;;  %431 = vmatpush.msra.mxu2 %v1254_v15  ;;  %v324_v30 = vsub.f32 %v1251_v14, %v323_v22  ;;  %v330_v31 = vsub.f32 %v1254_v15, %v1908_v23  ;;  %v336_v32 = vsub.f32 %v1258_v16, %v1907_v24  ;;  %v1902_v35 = vand.u32 4294901760, %v1269_v20  ;;  %s1470_s16 = sshll.u32 %s1955_s29, 3 }
  0x13   : > { %490 = vmatpush.msra.mxu3 %v1226_v5  ;;  %v342_v39 = vsub.f32 %v1263_v18, %v1906_v27  ;;  %v1316_v40 = vsub.f32 %v264_v13, %v1279_v25  ;;  %v348_v41 = vsub.f32 %v1266_v19, %v1903_v28  ;;  %v1326_v44 = vand.u32 4294901760, %v261_v36  ;;  %s1499_s23 = scalar_lea.vmem %s1888_s0, %s1470_s16  ;;  %s1505_s26 = scalar_lea.vmem %s1889_s1, %s1470_s16 }
  0x14   : > { %279 = vmatpush.msra.mxu0 %v1237_v9  ;;  %v325_v37 = vand.u32 4294901760, %v324_v30  ;;  %434 = vmatpush.msra.mxu2 %v1258_v16  ;;  %v331_v38 = vand.u32 4294901760, %v330_v31  ;;  %v337_v43 = vand.u32 4294901760, %v336_v32  ;;  %v1901_v45 = vand.u32 4294901760, %v1288_v29  ;;  %v659_v32 = vld [vmem:[%s1891_s3 + $0x68] sm:$0xff] }
  0x15   : > { %492 = vmatpush.msra.mxu3 %v1237_v9  ;;  %v1330_v46 = vsub.f32 %v263_v21, %v1301_v33  ;;  %v1335_v47 = vsub.f32 %v262_v26, %v1304_v34  ;;  %v343_v49 = vand.u32 4294901760, %v342_v39  ;;  %v354_v50 = vsub.f32 %v1269_v20, %v1902_v35 }
  0x16   : > { %281 = vmatpush.msra.mxu0 %v1239_v10  ;;  %326 = vmatpush.msra.mxu1 %v325_v37  ;;  %v1344_v51 = vand.u32 4294901760, %v260_v42  ;;  %v1899_v52 = vand.u32 4294901760, %v1316_v40  ;;  %v349_v53 = vand.u32 4294901760, %v348_v41  ;;  %v360_v55 = vsub.f32 %v1288_v29, %v1901_v45 }
  0x17   : > { %437 = vmatpush.msra.mxu2 %v1263_v18  ;;  %494 = vmatpush.msra.mxu3 %v1239_v10  ;;  %v1356_v56 = vand.u32 4294901760, %v259_v48  ;;  %v1897_v57 = vand.u32 4294901760, %v1330_v46  ;;  %v1360_v58 = vsub.f32 %v261_v36, %v1326_v44  ;;  %v1896_v61 = vand.u32 4294901760, %v1335_v47 }
  0x18   : > { %283 = vmatpush.msra.mxu0 %v1241_v11  ;;  %332 = vmatpush.msra.mxu1 %v331_v38  ;;  %v355_v62 = vand.u32 4294901760, %v354_v50  ;;  %v366_v63 = vsub.f32 %v1316_v40, %v1899_v52  ;;  %v1379_v0 = vand.u32 4294901760, %v258_v54  ;;  %v1382_v1 = vsub.f32 %v260_v42, %v1344_v51 }
  0x19   : > { %440 = vmatpush.msra.mxu2 %v1266_v19  ;;  %496 = vmatpush.msra.mxu3 %v1241_v11  ;;  %v1389_v6 = vand.u32 4294901760, %v257_v59  ;;  %v1394_v8 = vand.u32 4294901760, %v661_v60  ;;  %v361_v12 = vand.u32 4294901760, %v360_v55  ;;  %v372_v13 = vsub.f32 %v1330_v46, %v1897_v57 }
  0x1a   : > { %285 = vmatpush.msra.mxu0 %v1260_v17  ;;  %338 = vmatpush.msra.mxu1 %v337_v43  ;;  %1918 = vst [vmem:[#allocation2_spill] sm:$0xff] %v1379_v0  ;;  %v1895_v21 = vand.u32 4294901760, %v1360_v58  ;;  %v1403_v26 = vsub.f32 %v259_v48, %v1356_v56  ;;  %v378_v30 = vsub.f32 %v1335_v47, %v1896_v61  ;;  %v1410_v31 = vand.u32 4294901760, %v660_v2  ;;  %v658_v43 = vld [vmem:[%s1891_s3 + $0x60] sm:$0xff] }
  0x1b   : > { %443 = vmatpush.msra.mxu2 %v1269_v20  ;;  %498 = vmatpush.msra.mxu3 %v1260_v17  ;;  %1919 = vst [vmem:[#allocation3_spill] sm:$0xff] %v1389_v6  ;;  %v367_v36 = vand.u32 4294901760, %v366_v63  ;;  %v1416_v37 = vand.u32 4294901760, %v256_v7  ;;  %v1894_v38 = vand.u32 4294901760, %v1382_v1  ;;  %v1420_v39 = vsub.f32 %v258_v54, %v1379_v0  ;;  %v657_v54 = vld [vmem:[%s1891_s3 + $0x58] sm:$0xff] }
  0x1c   : > { %287 = vmatpush.msra.mxu0 %v1279_v25  ;;  %344 = vmatpush.msra.mxu1 %v343_v49  ;;  %v1425_v41 = vsub.f32 %v257_v59, %v1389_v6  ;;  %v1428_v42 = vsub.f32 %v661_v60, %v1394_v8  ;;  %v373_v48 = vand.u32 4294901760, %v372_v13  ;;  %v384_v49 = vsub.f32 %v1360_v58, %v1895_v21  ;;  %v656_v13 = vld [vmem:[%s1891_s3 + $0x50] sm:$0xff] }
  0x1d   : > { %446 = vmatpush.msra.mxu2 %v1288_v29  ;;  %500 = vmatpush.msra.mxu3 %v1279_v25  ;;  %v1898_v50 = vand.u32 4294901760, %v1403_v26  ;;  %v379_v55 = vand.u32 4294901760, %v378_v30  ;;  %v1449_v59 = vsub.f32 %v660_v2, %v1410_v31  ;;  %v390_v60 = vsub.f32 %v1382_v1, %v1894_v38 }
  0x1e   : > { %289 = vmatpush.msra.mxu0 %v1301_v33  ;;  %350 = vmatpush.msra.mxu1 %v349_v53  ;;  %v1441_v53 = vand.u32 4294901760, %v659_v32  ;;  %v1457_v63 = vsub.f32 %v256_v7, %v1416_v37  ;;  %v1905_v2 = vand.u32 4294901760, %v1425_v41  ;;  %v1904_v30 = vand.u32 4294901760, %v1428_v42 }
  0x1f   : > { %449 = vmatpush.msra.mxu2 %v1316_v40  ;;  %502 = vmatpush.msra.mxu3 %v1301_v33  ;;  %v385_v7 = vand.u32 4294901760, %v384_v49  ;;  %v396_v38 = vsub.f32 %v1403_v26, %v1898_v50  ;;  %v1909_v61 = vand.u32 4294901760, %v1449_v59  ;;  %v1482_v57 = vand.u32 4294901760, %v656_v13 }
  0x20   : > { %291 = vmatpush.msra.mxu0 %v1304_v34  ;;  %356 = vmatpush.msra.mxu1 %v355_v62  ;;  %v1900_v62 = vand.u32 4294901760, %v1420_v39  ;;  %v1477_v21 = vsub.f32 %v659_v32, %v1441_v53  ;;  %v391_v49 = vand.u32 4294901760, %v390_v60  ;;  %v1910_v50 = vand.u32 4294901760, %v1457_v63 }
  0x21   : > { %452 = vmatpush.msra.mxu2 %v1330_v46  ;;  %504 = vmatpush.msra.mxu3 %v1304_v34  ;;  %v397_v45 = vand.u32 4294901760, %v396_v38  ;;  %v250_v38 = vld [vmem:[%s1499_s23] sm:$0xff] }
  0x22   : > { %293 = vmatpush.msra.mxu0 %v1326_v44  ;;  %362 = vmatpush.msra.mxu1 %v361_v12  ;;  %v1459_v12 = vand.u32 4294901760, %v658_v43  ;;  %v402_v32 = vsub.f32 %v1420_v39, %v1900_v62  ;;  %v654_v62 = vld [vmem:[%s1891_s3 + $0x40] sm:$0xff]  ;;  %v414_v24 = vsub.f32 %v1457_v63, %v1910_v50  ;;  %v1921_v50 = vand.u32 4294901760, %v1477_v21 }
  0x23   : > { %455 = vmatpush.msra.mxu2 %v1335_v47  ;;  %506 = vmatpush.msra.mxu3 %v1326_v44 }
  0x24   : > { %295 = vmatpush.msra.mxu0 %v1344_v51  ;;  %368 = vmatpush.msra.mxu1 %v367_v36  ;;  %1920 = vst [vmem:[#allocation4_spill] sm:$0xff] %v1459_v12  ;;  %v1468_v36 = vand.u32 4294901760, %v657_v54  ;;  %v1493_v52 = vsub.f32 %v658_v43, %v1459_v12  ;;  %v408_v43 = vsub.f32 %v1425_v41, %v1905_v2  ;;  %v252_v2 = vld [vmem:[%s1505_s26] sm:$0xff]  ;;  %v403_v27 = vand.u32 4294901760, %v402_v32 }
  0x25   : > { %458 = vmatpush.msra.mxu2 %v1360_v58  ;;  %508 = vmatpush.msra.mxu3 %v1344_v51  ;;  %v726_v23 = vsub.f32 %v1477_v21, %v1921_v50  ;;  %v1561_v14 = vadd.f32 %v252_v2, %v250_v38  ;;  %v415_v50 = vand.u32 4294901760, %v414_v24 }
  0x26   : > { %297 = vmatpush.msra.mxu0 %v1356_v56  ;;  %374 = vmatpush.msra.mxu1 %v373_v48  ;;  %v655_v48 = vld [vmem:[%s1891_s3 + $0x48] sm:$0xff]  ;;  %v1516_v60 = vsub.f32 %v657_v54, %v1468_v36  ;;  %v720_v54 = vsub.f32 %v1449_v59, %v1909_v61  ;;  %v1543_v61 = vand.u32 4294901760, %v654_v62  ;;  %v409_v35 = vand.u32 4294901760, %v408_v43 }
  0x27   : > { %461 = vmatpush.msra.mxu2 %v1382_v1  ;;  %510 = vmatpush.msra.mxu3 %v1356_v56  ;;  %v1523_v28 = vand.u32 4294901760, %v655_v48  ;;  %v727_v24 = vand.u32 4294901760, %v726_v23 }
  0x28   : > { %299 = vmatpush.msra.mxu0 %v1379_v0  ;;  %380 = vmatpush.msra.mxu1 %v379_v55  ;;  %v714_v55 = vsub.f32 %v1428_v42, %v1904_v30  ;;  %v1531_v30 = vsub.f32 %v656_v13, %v1482_v57  ;;  %v652_v13 = vld [vmem:[%s1891_s3 + $0x30] sm:$0xff]  ;;  %v721_v43 = vand.u32 4294901760, %v720_v54  ;;  %v1574_v2 = vsub.f32 %v654_v62, %v1543_v61 }
  0x29   : > { %464 = vmatpush.msra.mxu2 %v1403_v26  ;;  %512 = vmatpush.msra.mxu3 %v1379_v0  ;;  %v1925_v54 = vand.u32 4294901760, %v1516_v60 }
  0x2a   : > { %301 = vmatpush.msra.mxu0 %v1389_v6  ;;  %386 = vmatpush.msra.mxu1 %v385_v7  ;;  %v653_v7 = vld [vmem:[%s1891_s3 + $0x38] sm:$0xff] }
  0x2b   : > { %467 = vmatpush.msra.mxu2 %v1420_v39  ;;  %514 = vmatpush.msra.mxu3 %v1389_v6  ;;  %v1557_v6 = vsub.f32 %v655_v48, %v1523_v28  ;;  %v1559_v0 = vand.u32 4294901760, %v653_v7  ;;  %v1923_v48 = vand.u32 4294901760, %v1493_v52  ;;  %v738_v38 = vsub.f32 %v1516_v60, %v1925_v54 }
  0x2c   : > { %303 = vmatpush.msra.mxu0 %v1416_v37  ;;  %392 = vmatpush.msra.mxu1 %v391_v49  ;;  %v715_v49 = vand.u32 4294901760, %v714_v55  ;;  %v1567_v55 = vand.u32 4294901760, %v652_v13 }
  0x2d   : > { %470 = vmatpush.msra.mxu2 %v1425_v41  ;;  %516 = vmatpush.msra.mxu3 %v1416_v37  ;;  %v732_v32 = vsub.f32 %v1493_v52, %v1923_v48  ;;  %v1587_v62 = vsub.f32 %v653_v7, %v1559_v0  ;;  %v650_v7 = vld [vmem:[%s1891_s3 + $0x20] sm:$0xff]  ;;  %v739_v54 = vand.u32 4294901760, %v738_v38  ;;  %v1928_v38 = vand.u32 4294901760, %v1269_v20  ;;  %v648_v20 = vld [vmem:[%s1891_s3 + $0x10] sm:$0xff] }
  0x2e   : > { %533 = vmatpush.msrb.mxu0 %v323_v22  ;;  %398 = vmatpush.msra.mxu1 %v397_v45  ;;  %v1922_v22 = vand.u32 4294901760, %v1254_v15  ;;  %v1913_v45 = vand.u32 4294901760, %v1531_v30  ;;  %v1924_v15 = vand.u32 4294901760, %v1258_v16  ;;  %v1590_v16 = vand.u32 4294901760, %v1561_v14 }
  0x2f   : > { %473 = vmatpush.msra.mxu2 %v1457_v63  ;;  %716 = vmatpush.msrb.mxu3 %v715_v49  ;;  %v1926_v49 = vand.u32 4294901760, %v1263_v18  ;;  %v1598_v23 = vsub.f32 %v652_v13, %v1567_v55  ;;  %v733_v48 = vand.u32 4294901760, %v732_v32  ;;  %v1917_v18 = vand.u32 4294901760, %v1574_v2  ;;  %v649_v13 = vld [vmem:[%s1891_s3 + $0x18] sm:$0xff] }
  0x30   : > { %537 = vmatpush.msrb.mxu0 %v1922_v22  ;;  %404 = vmatpush.msra.mxu1 %v403_v27  ;;  %v651_v27 = vld [vmem:[%s1891_s3 + $0x28] sm:$0xff]  ;;  %v1914_v22 = vand.u32 4294901760, %v1557_v6 }
  0x31   : > { %663 = vmatpush.msrb.mxu2 %v1394_v8  ;;  %722 = vmatpush.msrb.mxu3 %v721_v43  ;;  %v1927_v43 = vand.u32 4294901760, %v1266_v19  ;;  %v1622_v19 = vsub.f32 %v1561_v14, %v1590_v16 }
  0x32   : > { %541 = vmatpush.msrb.mxu0 %v1924_v15  ;;  %410 = vmatpush.msra.mxu1 %v409_v35  ;;  %v744_v35 = vsub.f32 %v1531_v30, %v1913_v45  ;;  %v1605_v15 = vand.u32 4294901760, %v651_v27  ;;  %v253_v45 = vld [vmem:[%s1505_s26 + $0x8] sm:$0xff]  ;;  %v750_v32 = vsub.f32 %v1557_v6, %v1914_v22  ;;  %v756_v22 = vsub.f32 %v1574_v2, %v1917_v18  ;;  %s248_s26 = scalar_lea.vmem %s1893_s5, %s1470_s16 }
  0x33   : > { %665 = vmatpush.msrb.mxu2 %v1410_v31  ;;  %728 = vmatpush.msrb.mxu3 %v727_v24  ;;  %v306_v18 = vand.u32 4294901760, %v1622_v19 }
  0x34   : > { %545 = vmatpush.msrb.mxu0 %v1926_v49  ;;  %416 = vmatpush.msra.mxu1 %v415_v50  ;;  %v251_v49 = vld [vmem:[%s1499_s23 + $0x8] sm:$0xff]  ;;  %v1635_v50 = vsub.f32 %v651_v27, %v1605_v15  ;;  %v1930_v27 = vand.u32 4294901760, %v1587_v62 }
  0x35   : > { %667 = vmatpush.msrb.mxu2 %v1441_v53  ;;  %734 = vmatpush.msrb.mxu3 %v733_v48  ;;  %v751_v48 = vand.u32 4294901760, %v750_v32 }
  0x36   : > { %549 = vmatpush.msrb.mxu0 %v1927_v43  ;;  %604 = vmatpush.msrb.mxu1 %v1222_v3  ;;  %v1624_v3 = vand.u32 4294901760, %v650_v7  ;;  %v745_v43 = vand.u32 4294901760, %v744_v35  ;;  %v1929_v35 = vand.u32 4294901760, %v1288_v29  ;;  %v773_v32 = vand.u32 4294901760, %v1635_v50 }
  0x37   : > { %669 = vmatpush.msrb.mxu2 %v1459_v12  ;;  %v1637_v12 = vand.u32 4294901760, %v649_v13  ;;  %740 = vmatpush.msrb.mxu3 %v739_v54  ;;  %v1661_v54 = vand.u32 4294901760, %v648_v20 }
  0x38   : > { %553 = vmatpush.msrb.mxu0 %v1928_v38  ;;  %606 = vmatpush.msrb.mxu1 %v1224_v4  ;;  %v1642_v4 = vadd.f32 %v253_v45, %v251_v49  ;;  %v762_v38 = vsub.f32 %v1587_v62, %v1930_v27  ;;  %v1653_v24 = vsub.f32 %v650_v7, %v1624_v3  ;;  %v1931_v45 = vand.u32 4294901760, %v1316_v40  ;;  %v647_v49 = vld [vmem:[%s1891_s3 + $0x8] sm:$0xff]  ;;  %v646_v27 = vld [vmem:[%s1891_s3] sm:$0xff] }
  0x39   : > { %671 = vmatpush.msrb.mxu2 %v1468_v36  ;;  %746 = vmatpush.msrb.mxu3 %v745_v43  ;;  %v757_v7 = vand.u32 4294901760, %v756_v22  ;;  %v1669_v40 = vsub.f32 %v649_v13, %v1637_v12  ;;  %v307_v13 = vsub.f32 %v1622_v19, %v306_v18 }
  0x3a   : > { %557 = vmatpush.msrb.mxu0 %v1929_v35  ;;  %608 = vmatpush.msrb.mxu1 %v1226_v5  ;;  %v1932_v5 = vand.u32 4294901760, %v1598_v23  ;;  %v1933_v35 = vand.u32 4294901760, %v1330_v46  ;;  %v763_v22 = vand.u32 4294901760, %v762_v38  ;;  %v779_v43 = vand.u32 4294901760, %v1653_v24 }
  0x3b   : > { %673 = vmatpush.msrb.mxu2 %v1482_v57  ;;  %752 = vmatpush.msrb.mxu3 %v751_v48  ;;  %v1934_v46 = vand.u32 4294901760, %v1335_v47  ;;  %v774_v48 = vsub.f32 %v1635_v50, %v773_v32  ;;  %v785_v38 = vand.u32 4294901760, %v1669_v40  ;;  %v1702_v47 = vand.u32 4294901760, %v646_v27 }
  0x3c   : > { %561 = vmatpush.msrb.mxu0 %v1931_v45  ;;  %610 = vmatpush.msrb.mxu1 %v1237_v9  ;;  %v768_v29 = vsub.f32 %v1598_v23, %v1932_v5  ;;  %v1672_v9 = vand.u32 4294901760, %v1642_v4  ;;  %v1685_v45 = vand.u32 4294901760, %v647_v49  ;;  %v1691_v5 = vsub.f32 %v648_v20, %v1661_v54 }
  0x3d   : > { %675 = vmatpush.msrb.mxu2 %v1523_v28  ;;  %758 = vmatpush.msrb.mxu3 %v757_v7  ;;  %v308_v20 = vand.u32 4294901760, %v307_v13 }
  0x3e   : > { %565 = vmatpush.msrb.mxu0 %v1933_v35  ;;  %612 = vmatpush.msrb.mxu1 %v1239_v10  ;;  %v769_v10 = vand.u32 4294901760, %v768_v29  ;;  %v1700_v35 = vsub.f32 %v1642_v4, %v1672_v9  ;;  %v780_v29 = vsub.f32 %v1653_v24, %v779_v43  ;;  %v1712_v7 = vsub.f32 %v647_v49, %v1685_v45 }
  0x3f   : > { %677 = vmatpush.msrb.mxu2 %v1543_v61  ;;  %764 = vmatpush.msrb.mxu3 %v763_v22  ;;  %v786_v22 = vsub.f32 %v1669_v40, %v785_v38  ;;  %v1724_v49 = vsub.f32 %v646_v27, %v1702_v47 }
  0x40   : > { %569 = vmatpush.msrb.mxu0 %v1934_v46  ;;  %614 = vmatpush.msrb.mxu1 %v1241_v11  ;;  %v1935_v11 = vand.u32 4294901760, %v1360_v58  ;;  %v1936_v46 = vand.u32 4294901760, %v1382_v1  ;;  %v791_v58 = vand.u32 4294901760, %v1691_v5  ;;  %v314_v13 = vand.u32 4294901760, %v1700_v35 }
  0x41   : > { %679 = vmatpush.msrb.mxu2 %v1559_v0  ;;  %770 = vmatpush.msrb.mxu3 %v769_v10  ;;  %v1937_v1 = vand.u32 4294901760, %v1403_v26  ;;  %v797_v10 = vand.u32 4294901760, %v1712_v7  ;;  %v787_v26 = vand.u32 4294901760, %v786_v22 }
  0x42   : > { %573 = vmatpush.msrb.mxu0 %v1935_v11  ;;  %616 = vmatpush.msrb.mxu1 %v1260_v17  ;;  %v775_v17 = vand.u32 4294901760, %v774_v48  ;;  %v1938_v48 = vand.u32 4294901760, %v1420_v39  ;;  %v792_v27 = vsub.f32 %v1691_v5, %v791_v58  ;;  %v803_v11 = vand.u32 4294901760, %v1724_v49 }
  0x43   : > { %681 = vmatpush.msrb.mxu2 %v1567_v55  ;;  %309 = vmatmul.f32.vlgmr.msra.gmra.mxu0 %v308_v20  ;;  %v1939_v20 = vand.u32 4294901760, %v1425_v41  ;;  %v1940_v39 = vand.u32 4294901760, %v1457_v63 }
  0x44   : > { %577 = vmatpush.msrb.mxu0 %v1936_v46  ;;  %618 = vmatpush.msrb.mxu1 %v1279_v25  ;;  %v781_v25 = vand.u32 4294901760, %v780_v29  ;;  %v793_v29 = vand.u32 4294901760, %v792_v27  ;;  %v644_v46 = vmul.f32 %v1561_v14, %v1561_v14  ;;  %v1943_v14 = vld [vmem:[#allocation3_spill] sm:$0xff] }
  0x45   : > { %683 = vmatpush.msrb.mxu2 %v1605_v15  ;;  %776 = vmatpush.msrb.mxu3 %v775_v17  ;;  %v1941_v17 = vld [vmem:[#allocation2_spill] sm:$0xff] }
  0x46   : > { %581 = vmatpush.msrb.mxu0 %v1937_v1  ;;  %620 = vmatpush.msrb.mxu1 %v1301_v33  ;;  %v315_v33 = vsub.f32 %v1700_v35, %v314_v13  ;;  %v1767_v22 = vand.u32 4294901760, %v644_v46  ;;  %v1945_v1 = vand.u32 4294901760, %v1477_v21 }
  0x47   : > { %685 = vmatpush.msrb.mxu2 %v1624_v3  ;;  %418 = vmatmul.f32.vlgmr.msra.gmra.mxu1 %v1590_v16 }
  0x48   : > { %585 = vmatpush.msrb.mxu0 %v1938_v48  ;;  %622 = vmatpush.msrb.mxu1 %v1304_v34  ;;  %v798_v34 = vsub.f32 %v1712_v7, %v797_v10  ;;  %v316_v41 = vand.u32 4294901760, %v315_v33 }
  0x49   : > { %687 = vmatpush.msrb.mxu2 %v1637_v12  ;;  %782 = vmatpush.msrb.mxu3 %v781_v25 }
  0x4a   : > { %589 = vmatpush.msrb.mxu0 %v1939_v20  ;;  %624 = vmatpush.msrb.mxu1 %v1326_v44  ;;  %v804_v44 = vsub.f32 %v1724_v49, %v803_v11 }
  0x4b   : > { %689 = vmatpush.msrb.mxu2 %v1661_v54  ;;  %788 = vmatpush.msrb.mxu3 %v787_v26 }
  0x4c   : > { %593 = vmatpush.msrb.mxu0 %v1940_v39  ;;  %626 = vmatpush.msrb.mxu1 %v1344_v51  ;;  %v799_v51 = vand.u32 4294901760, %v798_v34  ;;  %v805_v63 = vand.u32 4294901760, %v804_v44  ;;  %v1162_v44 = vld [vmem:[%s1892_s4] ss:$0 sm:$0xff] }
  0x4d   : > { %476 = vmatmul.f32.vlgmr.msra.gmra.mxu2 %v1622_v19  ;;  %794 = vmatpush.msrb.mxu3 %v793_v29  ;;  %v1778_v19 = vsub.f32 %v644_v46, %v1767_v22 }
  0x4e   : > { %818 = vmatpush.msra.mxu0 %v1428_v42  ;;  %628 = vmatpush.msrb.mxu1 %v1356_v56  ;;  %v1942_v56 = vand.u32 4294901760, %v1428_v42  ;;  %v645_v42 = vmul.f32 %v1642_v4, %v1642_v4 }
  0x4f   : > { %691 = vmatpush.msrb.mxu2 %v1685_v45  ;;  %317 = vmatmul.f32.gmra.mxu0 %v316_v41 }
  0x50   : > { %821 = vmatpush.msra.mxu0 %v1449_v59  ;;  %520 = vmatmul.f32.vlgmr.msra.gmra.mxu3 %v306_v18  ;;  %v1944_v18 = vand.u32 4294901760, %v1449_v59  ;;  %v696_v59 = vand.u32 4294901760, %v1778_v19 }
  0x51   : > { %630 = vmatpush.msrb.mxu1 %v1941_v17  ;;  %693 = vmatpush.msrb.mxu2 %v1702_v47 }
  0x52   : > { %800 = vmatpush.msrb.mxu3 %v799_v51  ;;  %824 = vmatpush.msra.mxu0 %v1477_v21  ;;  %v1947_v21 = vand.u32 4294901760, %v1516_v60 }
  0x53   : > { %923 = vmatpush.msra.mxu2 %v1942_v56  ;;  %422 = vmatmul.f32.gmra.mxu1 %v1672_v9 }
  0x54   : > { %632 = vmatpush.msrb.mxu1 %v1943_v14  ;;  %806 = vmatpush.msrb.mxu3 %v805_v63 }
  0x55   : > { %827 = vmatpush.msra.mxu0 %v1493_v52  ;;  %927 = vmatpush.msra.mxu2 %v1944_v18 }
  0x56   : > { %994 = vmatpush.msra.mxu3 %v1394_v8  ;;  %634 = vmatpush.msrb.mxu1 %v1416_v37  ;;  %v1946_v37 = vand.u32 4294901760, %v1493_v52  ;;  %v697_v52 = vsub.f32 %v1778_v19, %v696_v59 }
  0x57   : > { %830 = vmatpush.msra.mxu0 %v1516_v60  ;;  %931 = vmatpush.msra.mxu2 %v1945_v1  ;;  %v1950_v60 = vand.u32 4294901760, %v1557_v6 }
  0x58   : > { %876 = vmatpush.msra.mxu1 %v1394_v8  ;;  %996 = vmatpush.msra.mxu3 %v1410_v31  ;;  %v1797_v8 = vand.u32 4294901760, %v645_v42 }
  0x59   : > { %481 = vmatmul.f32.gmra.mxu2 %v1700_v35  ;;  %833 = vmatpush.msra.mxu0 %v1531_v30  ;;  %v1949_v35 = vand.u32 4294901760, %v1531_v30  ;;  %v1951_v30 = vand.u32 4294901760, %v1574_v2 }
  0x5a   : > { %878 = vmatpush.msra.mxu1 %v1410_v31  ;;  %935 = vmatpush.msra.mxu2 %v1946_v37  ;;  %v1948_v31 = vld [vmem:[#allocation4_spill] sm:$0xff]  ;;  %v703_v4 = vsub.f32 %v645_v42, %v1797_v8 }
  0x5b   : > { %998 = vmatpush.msra.mxu3 %v1441_v53  ;;  %595 = vmatmul.f32.vlgmr.msrb.gmra.mxu0 %v1590_v16 }
  0x5c   : > { %526 = vmatmul.f32.gmra.mxu3 %v314_v13  ;;  %836 = vmatpush.msra.mxu0 %v1557_v6  ;;  %v1952_v6 = vand.u32 4294901760, %v1587_v62 }
  0x5d   : > { %880 = vmatpush.msra.mxu1 %v1441_v53  ;;  %939 = vmatpush.msra.mxu2 %v1947_v21  ;;  %v698_v53 = vand.u32 4294901760, %v697_v52 }
  0x5e   : > { %1000 = vmatpush.msra.mxu3 %v1948_v31  ;;  %636 = vmatmul.f32.vlgmr.msrb.gmra.mxu1 %v1590_v16  ;;  %v704_v16 = vand.u32 4294901760, %v703_v4 }
  0x5f   : > { %839 = vmatpush.msra.mxu0 %v1574_v2  ;;  %882 = vmatpush.msra.mxu1 %v1948_v31 }
  0x60   : > { %943 = vmatpush.msra.mxu2 %v1949_v35  ;;  %1002 = vmatpush.msra.mxu3 %v1468_v36 }
  0x61   : > { %842 = vmatpush.msra.mxu0 %v1587_v62  ;;  %884 = vmatpush.msra.mxu1 %v1468_v36  ;;  %v705_v36 = vsub.f32 %v703_v4, %v704_v16 }
  0x62   : > { %947 = vmatpush.msra.mxu2 %v1950_v60  ;;  %1004 = vmatpush.msra.mxu3 %v1482_v57 }
  0x63   : > { %845 = vmatpush.msra.mxu0 %v1598_v23  ;;  %886 = vmatpush.msra.mxu1 %v1482_v57  ;;  %v1953_v57 = vand.u32 4294901760, %v1598_v23 }
  0x64   : > { %951 = vmatpush.msra.mxu2 %v1951_v30  ;;  %1006 = vmatpush.msra.mxu3 %v1523_v28 }
  0x65   : > { %599 = vmatmul.f32.gmra.mxu0 %v1672_v9  ;;  %699 = vmatmul.f32.vlgmr.msrb.gmra.mxu2 %v698_v53 }
  0x66   : > { %808 = vmatmul.f32.vlgmr.msrb.gmra.mxu3 %v1767_v22  ;;  %848 = vmatpush.msra.mxu0 %v1635_v50 }
  0x67   : > { %888 = vmatpush.msra.mxu1 %v1523_v28  ;;  %955 = vmatpush.msra.mxu2 %v1952_v6  ;;  %v706_v28 = vand.u32 4294901760, %v705_v36 }
  0x68   : > { %1008 = vmatpush.msra.mxu3 %v1543_v61  ;;  %640 = vmatmul.f32.gmra.mxu1 %v1672_v9 }
  0x69   : > { %851 = vmatpush.msra.mxu0 %v1653_v24  ;;  %890 = vmatpush.msra.mxu1 %v1543_v61 }
  0x6a   : > { %959 = vmatpush.msra.mxu2 %v1953_v57  ;;  %1010 = vmatpush.msra.mxu3 %v1559_v0 }
  0x6b   : > { %854 = vmatpush.msra.mxu0 %v1669_v40  ;;  %892 = vmatpush.msra.mxu1 %v1559_v0 }
  0x6c   : > { %963 = vmatpush.msra.mxu2 %v773_v32  ;;  %1012 = vmatpush.msra.mxu3 %v1567_v55 }
  0x6d   : > { %857 = vmatpush.msra.mxu0 %v1691_v5  ;;  %894 = vmatpush.msra.mxu1 %v1567_v55 }
  0x6e   : > { %967 = vmatpush.msra.mxu2 %v779_v43  ;;  %1014 = vmatpush.msra.mxu3 %v1605_v15 }
  0x6f   : > { %707 = vmatmul.f32.gmra.mxu2 %v706_v28  ;;  %812 = vmatmul.f32.gmra.mxu3 %v1797_v8 }
  0x70   : > { %860 = vmatpush.msra.mxu0 %v1712_v7  ;;  %896 = vmatpush.msra.mxu1 %v1605_v15 }
  0x71   : > { %971 = vmatpush.msra.mxu2 %v785_v38  ;;  %1016 = vmatpush.msra.mxu3 %v1624_v3 }
  0x72   : > { %863 = vmatpush.msra.mxu0 %v1724_v49  ;;  %898 = vmatpush.msra.mxu1 %v1624_v3 }
  0x73   : > { %975 = vmatpush.msra.mxu2 %v791_v58  ;;  %1018 = vmatpush.msra.mxu3 %v1637_v12 }
  0x74   : > { %866 = vmatmul.f32.vlgmr.msra.gmra.mxu0 %v1778_v19  ;;  %900 = vmatpush.msra.mxu1 %v1637_v12 }
  0x75   : > { %979 = vmatpush.msra.mxu2 %v797_v10  ;;  %1020 = vmatpush.msra.mxu3 %v1661_v54 }
  0x76   : > { %902 = vmatpush.msra.mxu1 %v1661_v54 }
  0x77   : > { %983 = vmatpush.msra.mxu2 %v803_v11  ;;  %1022 = vmatpush.msra.mxu3 %v1685_v45 }
  0x78   : > { %985 = vmatmul.f32.vlgmr.msra.gmra.mxu2 %v1767_v22  ;;  %904 = vmatpush.msra.mxu1 %v1685_v45 }
  0x79   : > { %1024 = vmatpush.msra.mxu3 %v1702_v47 }
  0x7a   : > { %1026 = vmatmul.f32.vlgmr.msra.gmra.mxu3 %v1767_v22  ;;  %906 = vmatpush.msra.mxu1 %v1702_v47 }
  0x7b   : > { %910 = vmatmul.f32.vlgmr.msra.gmra.mxu1 %v696_v59 }
  0x7c   : > { %871 = vmatmul.f32.gmra.mxu0 %v703_v4 }
  0x80   : > { %989 = vmatmul.f32.gmra.mxu2 %v1797_v8 }
  0x82   : > { %1030 = vmatmul.f32.gmra.mxu3 %v1797_v8 }
  0x83   : > { %916 = vmatmul.f32.gmra.mxu1 %v704_v16 }
  0xc0   : > { %v310_v61 = vpop.f32.mrf.mxu0 }
  0xc4   : > { %v419_v0 = vpop.f32.mrf.mxu1 }
  0xc5   : > { %v420_v54 = vadd.f32 %v419_v0, %v310_v61 }
  0xcc   : > { %v318_v12 = vpop.f32.mrf.mxu0 }
  0xd0   : > { %v477_v55 = vpop.f32.mrf.mxu2  ;;  %v423_v62 = vpop.f32.mrf.mxu1 }
  0xd1   : > { %v478_v9 = vadd.f32 %v477_v55, %v420_v54  ;;  %v424_v47 = vadd.f32 %v423_v62, %v318_v12 }
  0xd3   : > { %v521_v2 = vpop.f32.mrf.mxu3 }
  0xd4   : > { %v522_v45 = vadd.f32 %v521_v2, %v478_v9 }
  0xd8   : > { %v596_v23 = vpop.f32.mrf.mxu0 }
  0xd9   : > { %v597_v13 = vadd.f32 %v596_v23, %v522_v45 }
  0xdb   : > { %v637_v3 = vpop.f32.mrf.mxu1 }
  0xdc   : > { %v482_v15 = vpop.f32.mrf.mxu2  ;;  %v638_v27 = vadd.f32 %v637_v3, %v597_v13 }
  0xdd   : > { %v483_v49 = vadd.f32 %v482_v15, %v424_v47 }
  0xde   : > { %v1034_v29 = vmul.f32 2.0, %v638_v27 }
  0xdf   : > { %v527_v50 = vpop.f32.mrf.mxu3 }
  0xe0   : > { %v528_v26 = vadd.f32 %v527_v50, %v483_v49 }
  0xe2   : > { %v600_v32 = vpop.f32.mrf.mxu0 }
  0xe3   : > { %v601_v46 = vadd.f32 %v600_v32, %v528_v26 }
  0xe5   : > { %v641_v43 = vpop.f32.mrf.mxu1 }
  0xe6   : > { %v642_v14 = vadd.f32 %v641_v43, %v601_v46 }
  0xe8   : > { %v700_v24 = vpop.f32.mrf.mxu2  ;;  %v1035_v59 = vmul.f32 2.0, %v642_v14 }
  0xe9   : > { %v809_v40 = vpop.f32.mrf.mxu3 }
  0xea   : > { %v810_v7 = vadd.f32 %v809_v40, %v700_v24 }
  0xf1   : > { %v867_v5 = vpop.f32.mrf.mxu0 }
  0xf2   : > { %v708_v38 = vpop.f32.mrf.mxu2  ;;  %v813_v58 = vpop.f32.mrf.mxu3  ;;  %v868_v25 = vadd.f32 %v867_v5, %v810_v7 }
  0xf3   : > { %v814_v34 = vadd.f32 %v813_v58, %v708_v38 }
  0xf8   : > { %v911_v10 = vpop.f32.mrf.mxu1 }
  0xf9   : > { %v912_v48 = vadd.f32 %v911_v10, %v868_v25  ;;  %v872_v11 = vpop.f32.mrf.mxu0 }
  0xfa   : > { %v873_v51 = vadd.f32 %v872_v11, %v814_v34 }
  0xfb   : > { %v986_v33 = vpop.f32.mrf.mxu2 }
  0xfc   : > { %v987_v20 = vadd.f32 %v986_v33, %v912_v48 }
  0xfd   : > { %v1027_v39 = vpop.f32.mrf.mxu3 }
  0xfe   : > { %v1028_v41 = vadd.f32 %v1027_v39, %v987_v20 }
 0x100   : > { %v1036_v63 = vsub.f32 %v1028_v41, %v1034_v29  ;;  %v917_v17 = vpop.f32.mrf.mxu1 }
 0x101   : > { %v918_v22 = vadd.f32 %v917_v17, %v873_v51 }
 0x102   : > { %v1042_v56 = vadd.f32 %v1162_v44, %v1036_v63 }
 0x103   : > { %v990_v18 = vpop.f32.mrf.mxu2 }
 0x104   : > { %v1044_v19 = vmax.f32 %v1042_v56, 0.0  ;;  %v991_v42 = vadd.f32 %v990_v18, %v918_v22 }
 0x105   : > { %v1031_v1 = vpop.f32.mrf.mxu3 }
 0x106   : > { %1163 = vrsqrt.f32 %v1044_v19  ;;  %v1032_v37 = vadd.f32 %v1031_v1, %v991_v42  ;;  %vm1053_vm0 = vcmp.eq.f32.partialorder %v1044_v19, inf  ;;  %v1056_v57 = vand.u32 2147483648, %v1044_v19 }
 0x107   : > { %vm1055_vm2 = vcmp.eq.f32.partialorder %v1044_v19, 0.0 }
 0x108   : > { %v1037_v8 = vsub.f32 %v1032_v37, %v1035_v59 }
 0x10a   : > { %v1043_v21 = vadd.f32 %v1162_v44, %v1037_v8 }
 0x10c   : > { %v1164_v52 = vpop.eup %1163  ;;  %v1045_v4 = vmax.f32 %v1043_v21, 0.0 }
 0x10d   : > { %v1047_v31 = vmul.f32 %v1164_v52, %v1044_v19 }
 0x10e   : > { %1165 = vrsqrt.f32 %v1045_v4  ;;  %vm1065_vm3 = vcmp.eq.f32.partialorder %v1045_v4, inf  ;;  %v1068_v23 = vand.u32 2147483648, %v1045_v4  ;;  %vm1067_vm4 = vcmp.eq.f32.partialorder %v1045_v4, 0.0 }
 0x10f   : > { %v1048_v35 = vmul.f32 %v1164_v52, %v1047_v31 }
 0x111   : > { %v1049_v53 = vmul.f32 0.5, %v1048_v35 }
 0x113   : > { %v1050_v60 = vsub.f32 1.5, %v1049_v53 }
 0x114   : > { %v1166_v16 = vpop.eup %1165 }
 0x115   : > { %v1051_v30 = vmul.f32 %v1164_v52, %v1050_v60  ;;  %v1059_v6 = vmul.f32 %v1166_v16, %v1045_v4 }
 0x117   : > { %v1052_v36 = vmul.f32 %v1051_v30, %v1044_v19  ;;  %v1060_v28 = vmul.f32 %v1166_v16, %v1059_v6 }
 0x119   : > { %v1054_v61 = vsel %vm1053_vm0, %v1044_v19, %v1052_v36  ;;  %v1061_v12 = vmul.f32 0.5, %v1060_v28 }
 0x11a   : > { %v1057_v0 = vsel %vm1055_vm2, %v1056_v57, %v1054_v61 }
 0x11b   : > { %1071 = vst.msk [vmem:[%s248_s26] sm:$0xff] %vm1070_vm1, %v1057_v0  ;;  %v1062_v55 = vsub.f32 1.5, %v1061_v12 }
 0x11d   : > { %v1063_v2 = vmul.f32 %v1166_v16, %v1062_v55 }
 0x11f   : > { %v1064_v62 = vmul.f32 %v1063_v2, %v1045_v4 }
 0x121   : > { %v1066_v15 = vsel %vm1065_vm3, %v1045_v4, %v1064_v62 }
 0x122   : > { %v1069_v50 = vsel %vm1067_vm4, %v1068_v23, %v1066_v15 }
 0x123   : > { %1072 = vst.msk [vmem:[%s248_s26 + $0x8] sm:$0xff] %vm1070_vm1, %v1069_v50 }
 0x124 PF: > { %s15_s18 = sadd.s32 1, %s1173_s18  }
 0x125   : > { %p12_p4 = scmp.ge.s32.totalorder %s15_s18, 4  }
 0x127   :  { %14 = sbr.rel (!%p12_p4) target bundleno = 1 (0x1), region = 73 }

</bundles_post_ra>
